<compile_context>
chip_gen: v7x
topology: tpu7x:2x2x1
jax: 0.10.0
libtpu: 0.0.40
codegen_flags: <defaults>
</compile_context>

<pallas_src>
import jax
import jax.numpy as jnp
from jax.experimental import pallas as pl
from jax.experimental.pallas import tpu as pltpu

_MiB = 1024 * 1024


def _vmem_capacity_bytes():
    """Physical VMEM per TensorCore; conservative fallback if query fails."""
    try:
        return int(pltpu.get_tpu_info().vmem_capacity_bytes)
    except Exception:
        return 64 * _MiB  # v7x per-core size; safe lower bound everywhere


def _sublane_pack(dtype):
    """Dtype-native sublane packing: 8 (32-bit), 16 (16-bit), 32 (8-bit)."""
    bits = jnp.dtype(dtype).itemsize * 8
    return max(8, 256 // bits)


def _pick_block_rows(nc, row_out_bytes, dtype, min_steps=8):
    """Rows (flattened N*C slabs) per grid step.

    Per step the double-buffered VMEM working set is
      2 * (in1 + in2 + out) = 4 * row_out_bytes * tb
    Budget is generation-aware (~32 MiB on 128 MiB chips, ~21 MiB on v7x's
    64 MiB per-core VMEM).  tb is additionally capped so the grid has at least
    `min_steps` steps when nc allows — this keeps the read/compute/write
    streams overlapped and feeds both TensorCores on v7x.
    """
    capacity = _vmem_capacity_bytes()
    budget = min(32 * _MiB, capacity // 3)
    pack = _sublane_pack(dtype)

    # Largest tb the VMEM budget allows (at least one packing unit).
    tb = max(pack, budget // (4 * row_out_bytes))

    # Never collapse to a single fat block: enforce >= min_steps grid steps.
    cap = -(-nc // min_steps)                       # ceil(nc / min_steps)
    cap = max(pack, ((cap + pack - 1) // pack) * pack)
    tb = min(tb, cap)

    # Round down to the dtype-native sublane packing.
    tb = max(pack, (tb // pack) * pack)

    # Sublane block dim must be a multiple of 8 OR equal the full array dim.
    if tb >= nc:
        tb = nc
    return tb


def _make_flat_kernel(l1):
    """Lane-dense path: output columns [0, l1) <- fea1, [l1, Lo) <- fea2."""

    def kernel(w_ref, f1_ref, f2_ref, o_ref):
        # Scalar SMEM reads first, cast to the compute dtype (no-op for f32).
        w1 = w_ref[0].astype(f1_ref.dtype)
        w2 = w_ref[1].astype(f2_ref.dtype)
        o_ref[:, :l1] = (w1 * f1_ref[...]).astype(o_ref.dtype)
        o_ref[:, l1:] = (w2 * f2_ref[...]).astype(o_ref.dtype)

    return kernel


def _make_3d_kernel(h1):
    """Sublane-concat path for non-128-aligned L1 with wide W."""

    def kernel(w_ref, f1_ref, f2_ref, o_ref):
        w1 = w_ref[0].astype(f1_ref.dtype)
        w2 = w_ref[1].astype(f2_ref.dtype)
        o_ref[:, :h1, :] = (w1 * f1_ref[...]).astype(o_ref.dtype)
        o_ref[:, h1:, :] = (w2 * f2_ref[...]).astype(o_ref.dtype)

    return kernel


def pusion_forward(fea1, fea2, w1, w2):
    """Pallas equivalent of Pusion.forward.

    fea1: (N, C, H1, W), fea2: (N, C, H2, W)  ->  (N, C, H1+H2, W)
    w1, w2: shape-(1,) float32 parameters.
    """
    N, C, H1, W = fea1.shape
    N2, C2, H2, W2 = fea2.shape
    assert (N2, C2, W2) == (N, C, W), "fea1/fea2 must agree on N, C, W"
    assert fea1.dtype == fea2.dtype, "dtype mismatch (torch.cat would raise)"
    Ho = H1 + H2
    nc = N * C
    L1, L2, Lo = H1 * W, H2 * W, Ho * W
    itemsize = jnp.dtype(fea1.dtype).itemsize
    row_out_bytes = Lo * itemsize

    # Pack both scalars into one (2,) f32 SMEM operand.
    w = jnp.concatenate([jnp.ravel(w1), jnp.ravel(w2)]).astype(jnp.float32)

    tb = _pick_block_rows(nc, row_out_bytes, fea1.dtype)
    grid = (pl.cdiv(nc, tb),)

    # VMEM accounting: double-buffered in1 + in2 + out blocks per grid step.
    footprint = 4 * tb * row_out_bytes
    capacity = _vmem_capacity_bytes()
    vmem_limit = min(max(footprint + footprint // 4 + 2 * _MiB, 16 * _MiB),
                     capacity - 8 * _MiB)
    assert footprint <= vmem_limit, (
        f"per-step VMEM footprint {footprint / _MiB:.1f} MiB exceeds the "
        f"{vmem_limit / _MiB:.1f} MiB limit; rows too wide for row-only tiling")
    # TODO(synk): add a lane-chunk grid axis for rows too wide to fit VMEM.

    cost = pl.CostEstimate(flops=nc * Lo, transcendentals=0,
                           bytes_accessed=2 * nc * Lo * itemsize)
    cparams = pltpu.CompilerParams(
        dimension_semantics=("parallel",),
        vmem_limit_bytes=int(vmem_limit),
    )

    # Layout choice: lane-dense flat path whenever the split point is
    # 128-aligned (or W is too narrow to benefit from a 3-D layout).
    use_flat = (L1 % 128 == 0) or (W < 128)

    if use_flat:
        f1 = fea1.reshape(nc, L1)          # pure-metadata, row-major reshape
        f2 = fea2.reshape(nc, L2)
        out = pl.pallas_call(
            _make_flat_kernel(L1),
            out_shape=jax.ShapeDtypeStruct((nc, Lo), fea1.dtype),
            grid_spec=pltpu.PrefetchScalarGridSpec(
                num_scalar_prefetch=0,
                grid=grid,
                in_specs=[
                    pl.BlockSpec(memory_space=pltpu.MemorySpace.SMEM),  # (2,) w
                    pl.BlockSpec((tb, L1), lambda i: (i, 0)),
                    pl.BlockSpec((tb, L2), lambda i: (i, 0)),
                ],
                out_specs=pl.BlockSpec((tb, Lo), lambda i: (i, 0)),
            ),
            compiler_params=cparams,
            cost_estimate=cost,
        )(w, f1, f2)
        return out.reshape(N, C, Ho, W)

    # Non-128-aligned split with wide rows: concat along the sublane axis so
    # the lane axis (W) stays dense and stores remain unmasked along lanes.
    f1 = fea1.reshape(nc, H1, W)
    f2 = fea2.reshape(nc, H2, W)
    out = pl.pallas_call(
        _make_3d_kernel(H1),
        out_shape=jax.ShapeDtypeStruct((nc, Ho, W), fea1.dtype),
        grid_spec=pltpu.PrefetchScalarGridSpec(
            num_scalar_prefetch=0,
            grid=grid,
            in_specs=[
                pl.BlockSpec(memory_space=pltpu.MemorySpace.SMEM),      # (2,) w
                pl.BlockSpec((tb, H1, W), lambda i: (i, 0, 0)),
                pl.BlockSpec((tb, H2, W), lambda i: (i, 0, 0)),
            ],
            out_specs=pl.BlockSpec((tb, Ho, W), lambda i: (i, 0, 0)),
        ),
        compiler_params=cparams,
        cost_estimate=cost,
    )(w, f1, f2)
    return out.reshape(N, C, Ho, W)


if __name__ == "__main__":
    # Deterministic parameter init, matching Pusion(m1=3, m2=1)
    w1 = jnp.array([3.0], dtype=jnp.float32)
    w2 = jnp.array([1.0], dtype=jnp.float32)

    key = jax.random.PRNGKey(0)
    k1, k2 = jax.random.split(key)
    fea1 = jax.random.normal(k1, (2, 4, 16, 16), dtype=jnp.float32)
    fea2 = jax.random.normal(k2, (2, 4, 16, 16), dtype=jnp.float32)

    out = pusion_forward(fea1, fea2, w1, w2)
    out = jax.block_until_ready(out)

    # Pure-JAX reference check
    ref = jnp.concatenate([w1[0] * fea1, w2[0] * fea2], axis=2)
    assert out.shape == (2, 4, 32, 16), out.shape
    assert jnp.allclose(out, ref, atol=1e-6), "mismatch vs reference"

    print("KERNEL_OK")
</pallas_src>

<mosaic_0001>
module attributes {stable_mosaic.version = 11 : i64} {
  func.func @kernel(%arg0: i32, %arg1: memref<2xf32, #tpu.memory_space<smem>>, %arg2: memref<8x256xf32, #tpu.memory_space<vmem>>, %arg3: memref<8x256xf32, #tpu.memory_space<vmem>>, %arg4: memref<8x512xf32, #tpu.memory_space<vmem>>) attributes {dimension_semantics = [#tpu.dimension_semantics<parallel>], iteration_bounds = array<i64: 1>, scalar_prefetch = 0 : i64, scratch_operands = 0 : i64, tpu.core_type = #tpu.core_type<tc>, window_params = [{transform_indices = @transform_0, window_bounds = array<i64: 2>}, {transform_indices = @transform_1, window_bounds = array<i64: 8, 256>}, {transform_indices = @transform_2, window_bounds = array<i64: 8, 256>}, {transform_indices = @transform_3, window_bounds = array<i64: 8, 512>}]} {
    %c0 = arith.constant 0 : index
    %0 = memref.load %arg1[%c0] : memref<2xf32, #tpu.memory_space<smem>>
    %c1 = arith.constant 1 : index
    %1 = memref.load %arg1[%c1] : memref<2xf32, #tpu.memory_space<smem>>
    %c0_0 = arith.constant 0 : index
    %c0_1 = arith.constant 0 : index
    %2 = vector.load %arg2[%c0_0, %c0_1] : memref<8x256xf32, #tpu.memory_space<vmem>>, vector<8x256xf32>
    %3 = vector.broadcast %0 : f32 to vector<8x256xf32>
    %4 = arith.mulf %3, %2 : vector<8x256xf32>
    %c0_2 = arith.constant 0 : index
    %c0_3 = arith.constant 0 : index
    %5 = vector.load %arg4[%c0_2, %c0_3] : memref<8x512xf32, #tpu.memory_space<vmem>>, vector<8x256xf32>
    tpu.vector_store %arg4[%c0_2, %c0_3], %4 {strides = array<i32>} : memref<8x512xf32, #tpu.memory_space<vmem>>, vector<8x256xf32>,
    %c0_4 = arith.constant 0 : index
    %c0_5 = arith.constant 0 : index
    %6 = vector.load %arg3[%c0_4, %c0_5] : memref<8x256xf32, #tpu.memory_space<vmem>>, vector<8x256xf32>
    %7 = vector.broadcast %1 : f32 to vector<8x256xf32>
    %8 = arith.mulf %7, %6 : vector<8x256xf32>
    %c0_6 = arith.constant 0 : index
    %c256 = arith.constant 256 : index
    %9 = vector.load %arg4[%c0_6, %c256] : memref<8x512xf32, #tpu.memory_space<vmem>>, vector<8x256xf32>
    tpu.vector_store %arg4[%c0_6, %c256], %8 {strides = array<i32>} : memref<8x512xf32, #tpu.memory_space<vmem>>, vector<8x256xf32>,
    return
  }
  func.func @transform_0(%arg0: i32) -> i32 {
    %c0_i32 = arith.constant 0 : i32
    %c0_i32_0 = arith.constant 0 : i32
    return %c0_i32 : i32
  }
  func.func @transform_1(%arg0: i32) -> (i32, i32) {
    %c0_i32 = arith.constant 0 : i32
    %c0_i32_0 = arith.constant 0 : i32
    return %arg0, %c0_i32 : i32, i32
  }
  func.func @transform_2(%arg0: i32) -> (i32, i32) {
    %c0_i32 = arith.constant 0 : i32
    %c0_i32_0 = arith.constant 0 : i32
    return %arg0, %c0_i32 : i32, i32
  }
  func.func @transform_3(%arg0: i32) -> (i32, i32) {
    %c0_i32 = arith.constant 0 : i32
    %c0_i32_0 = arith.constant 0 : i32
    return %arg0, %c0_i32 : i32, i32
  }
}

</mosaic_0001>

<bundles_post_ra>
// kernel: tpu_custom_call.1
= control target key start
LH: loop header
LB: loop body
LE: loop exit
PB: predicated region body
PF: predicated region fallthrough
CT: control target
= control target key end

     0   :  { %8 = vsyncpa [#allocation5], 0  ;;  %s244_s0 = inlined_call_operand.hbm [shape: f32[2], index: 0, kind: input, shape index: {}]   ;;  %s245_s1 = inlined_call_operand.hbm [shape: f32[8,256], index: 1, kind: input, shape index: {}]   ;;  %s246_s2 = inlined_call_operand.hbm [shape: f32[8,256], index: 2, kind: input, shape index: {}]   ;;  %s247_s3 = inlined_call_operand.hbm [shape: f32[8,512], index: 3, kind: output, shape index: {}]  }
   0x1   :  { %9 = vsyncpa [#allocation3], 0 }
   0x2   :  { %10 = vsyncpa [#allocation8], 0 }
   0x3   :  { %11 = vsyncpa [#allocation4], 0  ;;  %s88_s14 = scalar_lea.hbm %s244_s0, 16 }
   0x4   :  { %p89_p0 = scmp.ne.s32.totalorder %s244_s0, %s88_s14  ;;  %p92_p1 = scmp.lt.u32.totalorder %s88_s14, %s244_s0 }
   0x6   :  { %p94_p2 = pnand %p92_p1, %p89_p0 }
   0x8   :  { %97 = shalt.err (!%p94_p2)
}
   0x9   :  { %s172_s19 = smov [#allocation2]   ;;  %s173_s22 = smov [#allocation6]  }
   0xa   :  { %19 = dma.hbm_to_smem %s244_s0, 16, %s172_s19, [#allocation5]  }
   0xb   :  { %s26_s23 = sshll.u32 %s173_s22, 4  ;;  %s174_s24 = smov [#allocation7]   ;;  %s27_s23 = int_to_ptr.vmem [resolvable:$true] %s26_s23 }
   0xc   :  { %s36_s25 = sshll.u32 %s174_s24, 4  ;;  %s98_s28 = scalar_lea.hbm %s245_s1, 256  ;;  %s37_s25 = int_to_ptr.vmem [resolvable:$true] %s36_s25 }
   0xd   :  { %p99_p3 = scmp.ne.s32.totalorder %s245_s1, %s98_s28  ;;  %p102_p4 = scmp.lt.u32.totalorder %s98_s28, %s245_s1 }
   0xf   :  { %p104_p5 = pnand %p102_p4, %p99_p3 }
  0x11   :  { %107 = shalt.err (!%p104_p5)
}
  0x12   :  { %s108_s0 = scalar_lea.vmem %s27_s23, 256  ;;  %p113_p7 = scmp.lt.s32.totalorder %s27_s23, %s27_s23 }
  0x13   :  { %p109_p6 = scmp.ne.s32.totalorder %s27_s23, %s108_s0  ;;  %p114_p8 = scmp.lt.s32.totalorder %s108_s0, %s108_s0 }
  0x15   :  { %p115_p9 = por %p114_p8, %p113_p7 }
  0x17   :  { %p116_p10 = pnand %p115_p9, %p109_p6 }
  0x19   :  { %119 = shalt.err (!%p116_p10)
}
  0x1a   :  { %29 = dma.hbm_to_vmem [thread:$0]  %s245_s1, 256, %s27_s23, [#allocation3]  }
  0x1b   :  { %s120_s10 = scalar_lea.hbm %s246_s2, 256 }
  0x1c   :  { %p121_p11 = scmp.ne.s32.totalorder %s246_s2, %s120_s10  ;;  %p124_p12 = scmp.lt.u32.totalorder %s120_s10, %s246_s2 }
  0x1e   :  { %p126_p13 = pnand %p124_p12, %p121_p11 }
  0x20   :  { %129 = shalt.err (!%p126_p13)
}
  0x21   :  { %s130_s15 = scalar_lea.vmem %s37_s25, 256  ;;  %p135_p1 = scmp.lt.s32.totalorder %s37_s25, %s37_s25 }
  0x22   :  { %p131_p0 = scmp.ne.s32.totalorder %s37_s25, %s130_s15  ;;  %p136_p2 = scmp.lt.s32.totalorder %s130_s15, %s130_s15 }
  0x24   :  { %p137_p3 = por %p136_p2, %p135_p1 }
  0x26   :  { %p138_p4 = pnand %p137_p3, %p131_p0 }
  0x28   :  { %141 = shalt.err (!%p138_p4)
}
  0x29   :  { %39 = dma.hbm_to_vmem [thread:$0]  %s246_s2, 256, %s37_s25, [#allocation8]  }
  0x2a   :  { %164 = dma.done.wait [#allocation5], 16  }
  0x2b   :  { %165 = vsyncadd [#allocation5], 4294967280 }
  0x2c   :  { %166 = dma.done.wait [#allocation3], 256  }
  0x2d   :  { %167 = vsyncadd [#allocation3], 4294967040 }
  0x2e   :  { %168 = dma.done.wait [#allocation8], 256  }
  0x2f   :  { %169 = vsyncadd [#allocation8], 4294967040 }
  0x30   :  { %49 = sfence }
  0x31   :  { %s50_s17 = sld [smem:[#allocation2]]  ;;  %s83_s18 = sld [smem:[#allocation2 + $0x1]]  ;;  %v52_v0 = vld [vmem:[#allocation6] sm:$0xff]  ;;  %v53_v1 = vld [vmem:[#allocation6 + $0x8] sm:$0xff]  ;;  %v59_v2 = vld [vmem:[#allocation7] sm:$0xff] }
  0x32   :  { %v60_v3 = vld [vmem:[#allocation7 + $0x8] sm:$0xff]  ;;  %s175_s19 = smov [#allocation9]  }
  0x33   :  { %s72_s20 = sshll.u32 %s175_s19, 4  ;;  %s73_s20 = int_to_ptr.vmem [resolvable:$true] %s72_s20 }
  0x34   :  { %s142_s2 = scalar_lea.vmem %s73_s20, 512  ;;  %p147_p6 = scmp.lt.s32.totalorder %s73_s20, %s73_s20 }
  0x35   :  { %p143_p5 = scmp.ne.s32.totalorder %s73_s20, %s142_s2  ;;  %p148_p7 = scmp.lt.s32.totalorder %s142_s2, %s142_s2 }
  0x37   :  { %v54_v4 = vstv %s50_s17  ;;  %v61_v5 = vstv %s83_s18  ;;  %p149_p8 = por %p148_p7, %p147_p6 }
  0x38   :  { %v55_v6 = vmul.f32 %v54_v4, %v52_v0  ;;  %v56_v7 = vmul.f32 %v54_v4, %v53_v1  ;;  %v62_v8 = vmul.f32 %v61_v5, %v59_v2  ;;  %v63_v9 = vmul.f32 %v61_v5, %v60_v3 }
  0x39   :  { %p150_p9 = pnand %p149_p8, %p143_p5 }
  0x3a   :  { %57 = vst [vmem:[#allocation9] sm:$0xff] %v55_v6  ;;  %58 = vst [vmem:[#allocation9 + $0x8] sm:$0xff] %v56_v7 }
  0x3b   :  { %64 = vst [vmem:[#allocation9 + $0x10] sm:$0xff] %v62_v8  ;;  %65 = vst [vmem:[#allocation9 + $0x18] sm:$0xff] %v63_v9 }
  0x3c   :  { %153 = shalt.err (!%p150_p9)
}
  0x3d   :  { %s154_s23 = scalar_lea.hbm %s247_s3, 512 }
  0x3e   :  { %p155_p10 = scmp.ne.s32.totalorder %s247_s3, %s154_s23  ;;  %p158_p11 = scmp.lt.u32.totalorder %s154_s23, %s247_s3 }
  0x40   :  { %p160_p12 = pnand %p158_p11, %p155_p10 }
  0x42   :  { %163 = shalt.err (!%p160_p12)
}
  0x43   :  { %75 = dma.vmem_to_hbm [thread:$0]  %s73_s20, 512, %s247_s3, [#allocation4]  }
  0x44   :  { %170 = dma.done.wait [#allocation4], 512  }
  0x45   :  { %171 = vsyncadd [#allocation4], 4294966784 }
  0x46   :  { %79 = vsyncpa [#allocation3], 1 }
  0x47   :  { %80 = vsyncpa [#allocation8], 1 }
  0x48   :  { %81 = vsyncpa [#allocation4], 1 }
  0x49   :  { %82 = vsyncpa [#allocation5], 1 }

</bundles_post_ra>
